<compile_context>
chip_gen: v5e
topology: v5e:2x2
jax: 0.10.0
libtpu: 0.0.40
codegen_flags: <defaults>
</compile_context>

<pallas_src>
import jax
import jax.numpy as jnp
from jax.experimental import pallas as pl
from jax.experimental.pallas import tpu as pltpu


_LANES = 128
_STEP_BYTES_BUDGET = 12 * 1024 * 1024   # streamed bytes per grid step (inputs + output)
_VMEM_LIMIT_BYTES = 48 * 1024 * 1024    # fits v7x's 64 MiB physical VMEM with headroom
_STATIC_UNROLL_MAX_D = 32


def _sublane_multiple(dtype) -> int:
    """Sublane granularity of a (rows, lanes) tile for this dtype (f32:8, bf16:16, int8:32)."""
    return max(8, 32 // jnp.dtype(dtype).itemsize)


def _make_argmin_kernel(dchunk: int, n_dchunks: int, structured: bool):
    """Running first-occurrence max over D, gathering the matching disparity.

    structured=False refs: cost_ref (dchunk, TR, C), disp_ref (dchunk, TR, C),
                           out_ref (TR, C) [, bc_ref, bd_ref VMEM scratch].
    structured=True  refs: disp_tab (B, D) SMEM, cost_ref (dchunk, TR, C),
                           out_ref (TR, C) [, bc_ref, bd_ref VMEM scratch].
    Strict '>' preserves torch.max's first-occurrence tie-breaking.
    """
    multi = n_dchunks > 1

    def kernel(*refs):
        if structured:
            disp_tab, cost_ref, out_ref = refs[0], refs[1], refs[2]
        else:
            cost_ref, disp_ref, out_ref = refs[0], refs[1], refs[2]

        b = pl.program_id(0)
        dk = pl.program_id(2)
        d_base = dk * dchunk

        if structured:
            def get_disp(d):
                return disp_tab[b, d_base + d]          # scalar f32 read from SMEM
        else:
            def get_disp(d):
                return disp_ref[d]                      # (TR, C) slab

        def step(d, carry):
            bc, bd = carry
            c = cost_ref[d]
            take = c > bc
            return jnp.where(take, c, bc), jnp.where(take, get_disp(d), bd)

        def reduce_chunk(carry):
            if dchunk <= _STATIC_UNROLL_MAX_D:
                bc, bd = carry
                for d in range(dchunk):                 # fully unrolled
                    bc, bd = step(d, (bc, bd))
                return bc, bd
            return jax.lax.fori_loop(0, dchunk, step, carry, unroll=4)

        def init_carry():
            bc0 = cost_ref[0]
            if structured:
                bd0 = jnp.full(bc0.shape, disp_tab[b, d_base], jnp.float32)
            else:
                bd0 = disp_ref[0]
            return bc0, bd0

        if not multi:
            _, bd = reduce_chunk(init_carry())
            out_ref[...] = bd.astype(out_ref.dtype)
            return

        # D-chunked accumulator path (very large D): running best lives in VMEM scratch.
        bc_ref, bd_ref = refs[-2], refs[-1]

        @pl.when(dk == 0)
        def _():
            bc0, bd0 = init_carry()
            bc_ref[...] = bc0
            bd_ref[...] = bd0

        bc, bd = reduce_chunk((bc_ref[...], bd_ref[...]))
        bc_ref[...] = bc
        bd_ref[...] = bd

        @pl.when(dk == n_dchunks - 1)
        def _():
            out_ref[...] = bd.astype(out_ref.dtype)

    return kernel


def argmin_pallas(cost_volume, disp_sample, *, step_bytes_budget=_STEP_BYTES_BUDGET):
    """disp_map[b,0,h,w] = disp_sample[b, argmax_d cost_volume[b,d,h,w], h, w].

    disp_sample may be the full (B, D, H, W) tensor (module-faithful path) or a
    per-batch candidate vector of shape (B, D) / (B, D, 1, 1) (structured fast path
    that streams only the cost volume).
    """
    # TODO(synk): only dim=1 (the module default) is implemented; other dims would
    # need a host-side transpose before calling the kernel.
    B, D, H, W = cost_volume.shape
    N = H * W

    structured = tuple(disp_sample.shape) != tuple(cost_volume.shape)
    if structured:
        assert disp_sample.size == B * D, (cost_volume.shape, disp_sample.shape)
        disp_tab = disp_sample.reshape(B, D).astype(jnp.float32)   # SMEM is 32-bit
    else:
        assert cost_volume.shape == disp_sample.shape, (
            cost_volume.shape, disp_sample.shape)
    out_dtype = disp_sample.dtype

    # ---- layout: lane-dense (rows, 128) when possible, else (H, W) blocks -------
    if N % _LANES == 0:
        rows, C = N // _LANES, _LANES
        cost = cost_volume.reshape(B, D, rows, C)          # free contiguous reshape
        disp_v = None if structured else disp_sample.reshape(B, D, rows, C)
    else:
        rows, C = H, W                                     # no padding, no copy
        cost = cost_volume
        disp_v = None if structured else disp_sample

    # ---- tile sizing -------------------------------------------------------------
    c_pad = pl.cdiv(C, _LANES) * _LANES                    # lanes actually used in VMEM
    cost_item = jnp.dtype(cost_volume.dtype).itemsize
    disp_item = 0 if structured else jnp.dtype(disp_sample.dtype).itemsize
    out_item = jnp.dtype(out_dtype).itemsize
    sub = max([_sublane_multiple(cost_volume.dtype), _sublane_multiple(out_dtype)]
              + ([] if structured else [_sublane_multiple(disp_sample.dtype)]))

    in_bytes_per_d = c_pad * (cost_item + disp_item)       # per row of the tile, per d
    out_bytes_row = c_pad * out_item

    # Large-D guard: keep even the minimal (sub-row) block inside the budget by
    # chunking D (accumulator over the trailing 'arbitrary' grid axis).
    max_dchunk = max(1, (step_bytes_budget // sub - out_bytes_row) // in_bytes_per_d)
    if D <= max_dchunk:
        dchunk = D
    else:
        dchunk = 1
        for cand in range(int(max_dchunk), 0, -1):
            if D % cand == 0:
                dchunk = cand
                break
    n_dchunks = D // dchunk

    per_row_bytes = dchunk * in_bytes_per_d + out_bytes_row
    tr = max(sub, (step_bytes_budget // per_row_bytes) // sub * sub)
    if tr >= rows:
        tr = rows          # full extent (allowed even when not a sublane multiple)
    # v7x megacore balance: make sure both TensorCores get (batch, row-tile) steps.
    while B * pl.cdiv(rows, tr) < 4 and tr > sub and rows > sub:
        new_tr = max(sub, (tr // 2) // sub * sub)
        if new_tr == tr:
            break
        tr = new_tr
    n_row_tiles = pl.cdiv(rows, tr)

    grid = (B, n_row_tiles, n_dchunks)

    # ---- specs ---------------------------------------------------------------
    if structured:
        vol_idx = lambda b, r, dk, tab: (b, dk, r, 0)
        out_idx = lambda b, r, dk, tab: (b, 0, r, 0)
    else:
        vol_idx = lambda b, r, dk: (b, dk, r, 0)
        out_idx = lambda b, r, dk: (b, 0, r, 0)

    vol_spec = pl.BlockSpec((None, dchunk, tr, C), vol_idx)
    in_specs = [vol_spec] if structured else [vol_spec, vol_spec]
    out_spec = pl.BlockSpec((None, None, tr, C), out_idx)

    scratch_shapes = []
    if n_dchunks > 1:
        scratch_shapes = [
            pltpu.VMEM((tr, C), cost_volume.dtype),
            pltpu.VMEM((tr, C), jnp.float32 if structured else out_dtype),
        ]

    grid_spec = pltpu.PrefetchScalarGridSpec(
        num_scalar_prefetch=1 if structured else 0,
        grid=grid,
        in_specs=in_specs,
        out_specs=out_spec,
        scratch_shapes=scratch_shapes)

    hbm_bytes = (B * D * N * cost_item + B * N * out_item
                 + (B * D * 4 if structured else B * D * N * disp_item))
    cost_estimate = pl.CostEstimate(
        flops=3 * B * D * N, transcendentals=0, bytes_accessed=hbm_bytes)

    call = pl.pallas_call(
        _make_argmin_kernel(dchunk, n_dchunks, structured),
        out_shape=jax.ShapeDtypeStruct((B, 1, rows, C), out_dtype),
        grid_spec=grid_spec,
        compiler_params=pltpu.CompilerParams(
            dimension_semantics=("parallel", "parallel", "arbitrary"),
            vmem_limit_bytes=_VMEM_LIMIT_BYTES),
        cost_estimate=cost_estimate)

    out = call(disp_tab, cost) if structured else call(cost, disp_v)
    return out.reshape(B, 1, H, W)


def _argmin_ref(cost_volume, disp_sample):
    idx = jnp.argmax(cost_volume, axis=1, keepdims=True)
    return jnp.take_along_axis(disp_sample, idx, axis=1)


if __name__ == "__main__":
    key = jax.random.PRNGKey(0)
    k1, k2, k3, k4 = jax.random.split(key, 4)

    # 1) Module-faithful path: full (B, D, H, W) cost volume and disparity samples.
    B, D, H, W = 2, 8, 16, 16
    cost = jax.random.normal(k1, (B, D, H, W), dtype=jnp.float32)
    disp = jax.random.uniform(k2, (B, D, H, W), dtype=jnp.float32,
                              minval=0.0, maxval=float(D))
    out = jax.block_until_ready(argmin_pallas(cost, disp))
    assert out.shape == (B, 1, H, W), out.shape
    assert jnp.allclose(out, _argmin_ref(cost, disp)), "general path mismatch"

    # 2) Non-128-divisible spatial size: (H, W)-blocked layout + ragged row tiles.
    B2, D2, H2, W2 = 1, 6, 20, 18
    cost2 = jax.random.normal(k3, (B2, D2, H2, W2), dtype=jnp.float32)
    disp2 = jax.random.uniform(k4, (B2, D2, H2, W2), dtype=jnp.float32,
                               minval=0.0, maxval=float(D2))
    out2 = jax.block_until_ready(argmin_pallas(cost2, disp2))
    assert jnp.allclose(out2, _argmin_ref(cost2, disp2)), "ragged-row path mismatch"

    # 3) Tiny VMEM budget forces row tiling AND D-chunking (scratch accumulator path).
    out3 = jax.block_until_ready(
        argmin_pallas(cost2, disp2, step_bytes_budget=48 * 1024))
    assert jnp.allclose(out3, _argmin_ref(cost2, disp2)), "D-chunked path mismatch"

    # 4) D large enough to take the fori_loop reduction path.
    B4, D4, H4, W4 = 1, 40, 8, 16
    cost4 = jax.random.normal(k1, (B4, D4, H4, W4), dtype=jnp.float32)
    disp4 = jax.random.uniform(k2, (B4, D4, H4, W4), dtype=jnp.float32,
                               minval=0.0, maxval=float(D4))
    out4 = jax.block_until_ready(argmin_pallas(cost4, disp4))
    assert jnp.allclose(out4, _argmin_ref(cost4, disp4)), "fori_loop path mismatch"

    # 5) Structured disp path: per-(B, D) disparity candidates streamed via SMEM
    #    (only the cost volume hits HBM -> ~2x less traffic).
    disp_bd = jnp.tile(jnp.linspace(0.0, float(D - 1), D, dtype=jnp.float32)[None],
                       (B, 1))                                # (B, D)
    out5 = jax.block_until_ready(argmin_pallas(cost, disp_bd))
    ref5 = _argmin_ref(cost, jnp.broadcast_to(disp_bd[:, :, None, None], cost.shape))
    assert jnp.allclose(out5, ref5), "structured-disp path mismatch"

    print("KERNEL_OK")
</pallas_src>

<mosaic_0001>
module attributes {stable_mosaic.version = 11 : i64} {
  func.func @kernel(%arg0: i32, %arg1: i32, %arg2: i32, %arg3: memref<1x8x2x128xf32, #tpu.memory_space<vmem>>, %arg4: memref<1x8x2x128xf32, #tpu.memory_space<vmem>>, %arg5: memref<1x1x2x128xf32, #tpu.memory_space<vmem>>) attributes {dimension_semantics = [#tpu.dimension_semantics<parallel>, #tpu.dimension_semantics<parallel>, #tpu.dimension_semantics<arbitrary>], iteration_bounds = array<i64: 2, 1, 1>, scalar_prefetch = 0 : i64, scratch_operands = 0 : i64, tpu.core_type = #tpu.core_type<tc>, window_params = [{transform_indices = @transform_0, window_bounds = array<i64: 1, 8, 2, 128>}, {transform_indices = @transform_1, window_bounds = array<i64: 1, 8, 2, 128>}, {transform_indices = @transform_2, window_bounds = array<i64: 1, 1, 2, 128>}]} {
    %c0 = arith.constant 0 : index
    %c0_0 = arith.constant 0 : index
    %c0_1 = arith.constant 0 : index
    %c0_2 = arith.constant 0 : index
    %0 = vector.load %arg3[%c0, %c0_0, %c0_1, %c0_2] : memref<1x8x2x128xf32, #tpu.memory_space<vmem>>, vector<1x1x2x128xf32>
    %1 = vector.shape_cast %0 : vector<1x1x2x128xf32> to vector<2x128xf32>
    %c0_3 = arith.constant 0 : index
    %c0_4 = arith.constant 0 : index
    %c0_5 = arith.constant 0 : index
    %c0_6 = arith.constant 0 : index
    %2 = vector.load %arg4[%c0_3, %c0_4, %c0_5, %c0_6] : memref<1x8x2x128xf32, #tpu.memory_space<vmem>>, vector<1x1x2x128xf32>
    %3 = vector.shape_cast %2 : vector<1x1x2x128xf32> to vector<2x128xf32>
    %c0_7 = arith.constant 0 : index
    %c0_8 = arith.constant 0 : index
    %c0_9 = arith.constant 0 : index
    %c0_10 = arith.constant 0 : index
    %4 = vector.load %arg3[%c0_7, %c0_8, %c0_9, %c0_10] : memref<1x8x2x128xf32, #tpu.memory_space<vmem>>, vector<1x1x2x128xf32>
    %5 = vector.shape_cast %4 : vector<1x1x2x128xf32> to vector<2x128xf32>
    %6 = arith.cmpf ogt, %5, %1 : vector<2x128xf32>
    %7 = arith.select %6, %5, %1 : vector<2x128xi1>, vector<2x128xf32>
    %c0_11 = arith.constant 0 : index
    %c0_12 = arith.constant 0 : index
    %c0_13 = arith.constant 0 : index
    %c0_14 = arith.constant 0 : index
    %8 = vector.load %arg4[%c0_11, %c0_12, %c0_13, %c0_14] : memref<1x8x2x128xf32, #tpu.memory_space<vmem>>, vector<1x1x2x128xf32>
    %9 = vector.shape_cast %8 : vector<1x1x2x128xf32> to vector<2x128xf32>
    %10 = arith.select %6, %9, %3 : vector<2x128xi1>, vector<2x128xf32>
    %c0_15 = arith.constant 0 : index
    %c1 = arith.constant 1 : index
    %c0_16 = arith.constant 0 : index
    %c0_17 = arith.constant 0 : index
    %11 = vector.load %arg3[%c0_15, %c1, %c0_16, %c0_17] : memref<1x8x2x128xf32, #tpu.memory_space<vmem>>, vector<1x1x2x128xf32>
    %12 = vector.shape_cast %11 : vector<1x1x2x128xf32> to vector<2x128xf32>
    %13 = arith.cmpf ogt, %12, %7 : vector<2x128xf32>
    %14 = arith.select %13, %12, %7 : vector<2x128xi1>, vector<2x128xf32>
    %c0_18 = arith.constant 0 : index
    %c1_19 = arith.constant 1 : index
    %c0_20 = arith.constant 0 : index
    %c0_21 = arith.constant 0 : index
    %15 = vector.load %arg4[%c0_18, %c1_19, %c0_20, %c0_21] : memref<1x8x2x128xf32, #tpu.memory_space<vmem>>, vector<1x1x2x128xf32>
    %16 = vector.shape_cast %15 : vector<1x1x2x128xf32> to vector<2x128xf32>
    %17 = arith.select %13, %16, %10 : vector<2x128xi1>, vector<2x128xf32>
    %c0_22 = arith.constant 0 : index
    %c2 = arith.constant 2 : index
    %c0_23 = arith.constant 0 : index
    %c0_24 = arith.constant 0 : index
    %18 = vector.load %arg3[%c0_22, %c2, %c0_23, %c0_24] : memref<1x8x2x128xf32, #tpu.memory_space<vmem>>, vector<1x1x2x128xf32>
    %19 = vector.shape_cast %18 : vector<1x1x2x128xf32> to vector<2x128xf32>
    %20 = arith.cmpf ogt, %19, %14 : vector<2x128xf32>
    %21 = arith.select %20, %19, %14 : vector<2x128xi1>, vector<2x128xf32>
    %c0_25 = arith.constant 0 : index
    %c2_26 = arith.constant 2 : index
    %c0_27 = arith.constant 0 : index
    %c0_28 = arith.constant 0 : index
    %22 = vector.load %arg4[%c0_25, %c2_26, %c0_27, %c0_28] : memref<1x8x2x128xf32, #tpu.memory_space<vmem>>, vector<1x1x2x128xf32>
    %23 = vector.shape_cast %22 : vector<1x1x2x128xf32> to vector<2x128xf32>
    %24 = arith.select %20, %23, %17 : vector<2x128xi1>, vector<2x128xf32>
    %c0_29 = arith.constant 0 : index
    %c3 = arith.constant 3 : index
    %c0_30 = arith.constant 0 : index
    %c0_31 = arith.constant 0 : index
    %25 = vector.load %arg3[%c0_29, %c3, %c0_30, %c0_31] : memref<1x8x2x128xf32, #tpu.memory_space<vmem>>, vector<1x1x2x128xf32>
    %26 = vector.shape_cast %25 : vector<1x1x2x128xf32> to vector<2x128xf32>
    %27 = arith.cmpf ogt, %26, %21 : vector<2x128xf32>
    %28 = arith.select %27, %26, %21 : vector<2x128xi1>, vector<2x128xf32>
    %c0_32 = arith.constant 0 : index
    %c3_33 = arith.constant 3 : index
    %c0_34 = arith.constant 0 : index
    %c0_35 = arith.constant 0 : index
    %29 = vector.load %arg4[%c0_32, %c3_33, %c0_34, %c0_35] : memref<1x8x2x128xf32, #tpu.memory_space<vmem>>, vector<1x1x2x128xf32>
    %30 = vector.shape_cast %29 : vector<1x1x2x128xf32> to vector<2x128xf32>
    %31 = arith.select %27, %30, %24 : vector<2x128xi1>, vector<2x128xf32>
    %c0_36 = arith.constant 0 : index
    %c4 = arith.constant 4 : index
    %c0_37 = arith.constant 0 : index
    %c0_38 = arith.constant 0 : index
    %32 = vector.load %arg3[%c0_36, %c4, %c0_37, %c0_38] : memref<1x8x2x128xf32, #tpu.memory_space<vmem>>, vector<1x1x2x128xf32>
    %33 = vector.shape_cast %32 : vector<1x1x2x128xf32> to vector<2x128xf32>
    %34 = arith.cmpf ogt, %33, %28 : vector<2x128xf32>
    %35 = arith.select %34, %33, %28 : vector<2x128xi1>, vector<2x128xf32>
    %c0_39 = arith.constant 0 : index
    %c4_40 = arith.constant 4 : index
    %c0_41 = arith.constant 0 : index
    %c0_42 = arith.constant 0 : index
    %36 = vector.load %arg4[%c0_39, %c4_40, %c0_41, %c0_42] : memref<1x8x2x128xf32, #tpu.memory_space<vmem>>, vector<1x1x2x128xf32>
    %37 = vector.shape_cast %36 : vector<1x1x2x128xf32> to vector<2x128xf32>
    %38 = arith.select %34, %37, %31 : vector<2x128xi1>, vector<2x128xf32>
    %c0_43 = arith.constant 0 : index
    %c5 = arith.constant 5 : index
    %c0_44 = arith.constant 0 : index
    %c0_45 = arith.constant 0 : index
    %39 = vector.load %arg3[%c0_43, %c5, %c0_44, %c0_45] : memref<1x8x2x128xf32, #tpu.memory_space<vmem>>, vector<1x1x2x128xf32>
    %40 = vector.shape_cast %39 : vector<1x1x2x128xf32> to vector<2x128xf32>
    %41 = arith.cmpf ogt, %40, %35 : vector<2x128xf32>
    %42 = arith.select %41, %40, %35 : vector<2x128xi1>, vector<2x128xf32>
    %c0_46 = arith.constant 0 : index
    %c5_47 = arith.constant 5 : index
    %c0_48 = arith.constant 0 : index
    %c0_49 = arith.constant 0 : index
    %43 = vector.load %arg4[%c0_46, %c5_47, %c0_48, %c0_49] : memref<1x8x2x128xf32, #tpu.memory_space<vmem>>, vector<1x1x2x128xf32>
    %44 = vector.shape_cast %43 : vector<1x1x2x128xf32> to vector<2x128xf32>
    %45 = arith.select %41, %44, %38 : vector<2x128xi1>, vector<2x128xf32>
    %c0_50 = arith.constant 0 : index
    %c6 = arith.constant 6 : index
    %c0_51 = arith.constant 0 : index
    %c0_52 = arith.constant 0 : index
    %46 = vector.load %arg3[%c0_50, %c6, %c0_51, %c0_52] : memref<1x8x2x128xf32, #tpu.memory_space<vmem>>, vector<1x1x2x128xf32>
    %47 = vector.shape_cast %46 : vector<1x1x2x128xf32> to vector<2x128xf32>
    %48 = arith.cmpf ogt, %47, %42 : vector<2x128xf32>
    %49 = arith.select %48, %47, %42 : vector<2x128xi1>, vector<2x128xf32>
    %c0_53 = arith.constant 0 : index
    %c6_54 = arith.constant 6 : index
    %c0_55 = arith.constant 0 : index
    %c0_56 = arith.constant 0 : index
    %50 = vector.load %arg4[%c0_53, %c6_54, %c0_55, %c0_56] : memref<1x8x2x128xf32, #tpu.memory_space<vmem>>, vector<1x1x2x128xf32>
    %51 = vector.shape_cast %50 : vector<1x1x2x128xf32> to vector<2x128xf32>
    %52 = arith.select %48, %51, %45 : vector<2x128xi1>, vector<2x128xf32>
    %c0_57 = arith.constant 0 : index
    %c7 = arith.constant 7 : index
    %c0_58 = arith.constant 0 : index
    %c0_59 = arith.constant 0 : index
    %53 = vector.load %arg3[%c0_57, %c7, %c0_58, %c0_59] : memref<1x8x2x128xf32, #tpu.memory_space<vmem>>, vector<1x1x2x128xf32>
    %54 = vector.shape_cast %53 : vector<1x1x2x128xf32> to vector<2x128xf32>
    %55 = arith.cmpf ogt, %54, %49 : vector<2x128xf32>
    %c0_60 = arith.constant 0 : index
    %c7_61 = arith.constant 7 : index
    %c0_62 = arith.constant 0 : index
    %c0_63 = arith.constant 0 : index
    %56 = vector.load %arg4[%c0_60, %c7_61, %c0_62, %c0_63] : memref<1x8x2x128xf32, #tpu.memory_space<vmem>>, vector<1x1x2x128xf32>
    %57 = vector.shape_cast %56 : vector<1x1x2x128xf32> to vector<2x128xf32>
    %58 = arith.select %55, %57, %52 : vector<2x128xi1>, vector<2x128xf32>
    %c0_64 = arith.constant 0 : index
    %c0_65 = arith.constant 0 : index
    %c0_66 = arith.constant 0 : index
    %c0_67 = arith.constant 0 : index
    %59 = vector.load %arg5[%c0_64, %c0_65, %c0_66, %c0_67] : memref<1x1x2x128xf32, #tpu.memory_space<vmem>>, vector<1x1x2x128xf32>
    %60 = vector.shape_cast %59 : vector<1x1x2x128xf32> to vector<2x128xf32>
    %61 = vector.shape_cast %58 : vector<2x128xf32> to vector<1x1x2x128xf32>
    tpu.vector_store %arg5[%c0_64, %c0_65, %c0_66, %c0_67], %61 {strides = array<i32>} : memref<1x1x2x128xf32, #tpu.memory_space<vmem>>, vector<1x1x2x128xf32>,
    return
  }
  func.func @transform_0(%arg0: i32, %arg1: i32, %arg2: i32) -> (i32, i32, i32, i32) {
    %c0_i32 = arith.constant 0 : i32
    %c0_i32_0 = arith.constant 0 : i32
    return %arg0, %arg2, %arg1, %c0_i32 : i32, i32, i32, i32
  }
  func.func @transform_1(%arg0: i32, %arg1: i32, %arg2: i32) -> (i32, i32, i32, i32) {
    %c0_i32 = arith.constant 0 : i32
    %c0_i32_0 = arith.constant 0 : i32
    return %arg0, %arg2, %arg1, %c0_i32 : i32, i32, i32, i32
  }
  func.func @transform_2(%arg0: i32, %arg1: i32, %arg2: i32) -> (i32, i32, i32, i32) {
    %c0_i32 = arith.constant 0 : i32
    %c0_i32_0 = arith.constant 0 : i32
    %c0_i32_1 = arith.constant 0 : i32
    return %arg0, %c0_i32, %arg1, %c0_i32_0 : i32, i32, i32, i32
  }
}

</mosaic_0001>

<bundles_post_ra>
// kernel: tpu_custom_call.1
= control target key start
LH: loop header
LB: loop body
LE: loop exit
PB: predicated region body
PF: predicated region fallthrough
CT: control target
= control target key end

     0   :  { %7 = vsyncpa [#allocation3], 0  ;;  %s851_s0 = inlined_call_operand.hbm [shape: f32[2,8,2,128], index: 0, kind: input, shape index: {}]   ;;  %s852_s1 = inlined_call_operand.hbm [shape: f32[2,8,2,128], index: 1, kind: input, shape index: {}]   ;;  %s853_s2 = inlined_call_operand.hbm [shape: f32[2,1,2,128], index: 2, kind: output, shape index: {}]  }
   0x1   :  { %9 = vsyncpa [#allocation3 + $0x1], 0 }
   0x2   :  { %10 = vsyncpa [#allocation6], 0 }
   0x3   :  { %12 = vsyncpa [#allocation6 + $0x1], 0 }
   0x4   :  { %13 = vsyncpa [#allocation4], 0 }
   0x5   :  { %15 = vsyncpa [#allocation4 + $0x1], 0  ;;  %s689_s9 = smov 0   ;;  %s691_s10 = smov 0  }
   0x6   :  { %s693_s11 = smov 0   ;;  %s695_s12 = smov 0  }
   0x7   :  { %s697_s13 = smov 0   ;;  %s699_s14 = smov 0  }
   0x8 LB: > { %s421_s15 = sadd.s32 4294967295, %s670_s14   ;;  %s422_s16 = sadd.s32 4294967294, %s670_s14   ;;  %s670_s14 = sphi %s699_s14, %s21_s14   ;;  %s666_s13 = sphi %s697_s13, %s863_s13   ;;  %s662_s12 = sphi %s695_s12, %s862_s12   ;;  %s658_s11 = sphi %s693_s11, %s861_s11   ;;  %s654_s10 = sphi %s691_s10, %s860_s10   ;;  %s650_s9 = sphi %s689_s9, %s859_s9  }
   0x9   : > { %s40_s17 = sadd.s32 1, %s666_s13  ;;  %s51_s18 = sadd.s32 1, %s658_s11 }
   0xa   : > { %p42_p0 = scmp.ge.s32.totalorder %s40_s17, 2  ;;  %p58_p1 = scmp.ne.s32.totalorder %s658_s11, %s654_s10 }
   0xb   : > { %p59_p2 = scmp.eq.s32.totalorder %s670_s14, 0  ;;  %p64_p3 = scmp.ne.s32.totalorder %s654_s10, %s650_s9 }
   0xc   : > { %s865_s17 = smov (%p42_p0, %s40_s17), 0  ;;  %p65_p5 = scmp.eq.s32.totalorder %s421_s15, 0 }
   0xd   : > { %p730_p4 = por %p59_p2, %p58_p1  ;;  %s44_s20 = ssub.s32 %s666_s13, %s865_s17 }
   0xe   : > { %p120_p6 = scmp.eq.s32.totalorder %s421_s15, 1  ;;  %p49_p7 = scmp.eq.s32.totalorder %s44_s20, 0 }
   0xf   : > { %p736_p8 = por %p65_p5, %p64_p3  ;;  %p126_p10 = scmp.eq.s32.totalorder %s422_s16, 1 }
  0x10   : > { %p740_p9 = por %p120_p6, %p58_p1  ;;  %p424_p12 = scmp.ge.s32.totalorder %s670_s14, 2 }
  0x11   : > { %s745_s23 = scalar_select %p49_p7, %s658_s11, %s51_s18  }
  0x12   : > { %p747_p11 = por %p126_p10, %p64_p3  ;;  %p472_p13 = scmp.lt.s32.totalorder %s670_s14, 2 }
  0x13   : > { %s754_s25 = sand.u32 1, %s658_s11   ;;  %s453_s27 = sshll.u32 %s666_s13, 4 }
  0x14   : > { %s425_s26 = sshll.u32 %s754_s25, 4  ;;  %s158_s30 = scalar_lea.hbm %s851_s0, %s453_s27 }
  0x15   : > { %s150_s3 = scalar_lea.vmem [#allocation2], %s425_s26  ;;  %s159_s5 = sshll.u32 %s158_s30, 4  ;;  %s160_s5 = int_to_ptr.hbm [resolvable:$true] %s159_s5 }
  0x16   : > { %s161_s4 = sshll.u32 %s150_s3, 4  ;;  %p763_p0 = pnand %p472_p13, %p730_p4  ;;  %s162_s4 = int_to_ptr.vmem [resolvable:$true] %s161_s4 }
  0x17   : > { %p431_p1 = scmp.ge.s32.totalorder %s670_s14, 1  ;;  %s147_s7 = scalar_lea.sflag [#allocation3], %s754_s25 }
  0x18   : > { %s672_s8 = smov 32   ;;  %s673_s15 = smov 2  }
  0x19   : > { %464 = dma.hbm_to_vmem [thread:$0]  (!%p763_p0), %s160_s5, 256, %s162_s4, %s147_s7, %s672_s8, %s672_s8, %s673_s15  }
  0x1a   : > { %p194_p2 = scmp.lt.s32.totalorder %s670_s14, 3  ;;  %s183_s20 = scalar_lea.hbm %s852_s1, %s453_s27 }
  0x1b   : > { %s184_s28 = sshll.u32 %s183_s20, 4  ;;  %s175_s19 = scalar_lea.vmem [#allocation5], %s425_s26  ;;  %s185_s28 = int_to_ptr.hbm [resolvable:$true] %s184_s28 }
  0x1c   : > { %p195_p3 = pnand %p431_p1, %p194_p2  ;;  %s186_s29 = sshll.u32 %s175_s19, 4  ;;  %s187_s29 = int_to_ptr.vmem [resolvable:$true] %s186_s29 }
  0x1d   : > { %s172_s30 = scalar_lea.sflag [#allocation6], %s754_s25  ;;  %s779_s3 = sand.u32 (!%p195_p3), 1, %s654_s10  }
  0x1e   : > { %467 = dma.hbm_to_vmem [thread:$0]  (!%p763_p0), %s185_s28, 256, %s187_s29, %s172_s30, %s672_s8, %s672_s8, %s673_s15  }
  0x1f   : > { %198 = sbr.rel (%p195_p3) target bundleno = 57 (0x39), region = 28  ;;  %s432_s4 = sshll.u32 (!%p195_p3), %s779_s3, 4 }
  0x20   : > { %s201_s5 = scalar_lea.sflag (!%p195_p3), [#allocation3], %s779_s3  ;;  %s783_s7 = scalar_lea.vmem (!%p195_p3), [#allocation2], %s432_s4 }
  0x24   : > { %637 = dma.done.wait (%p736_p8), %s201_s5, 256  }
  0x25   : > { %639 = vsyncadd (%p736_p8), %s201_s5, 4294967040  ;;  %s211_s25 = scalar_lea.sflag [#allocation6], %s779_s3  ;;  %s790_s26 = scalar_lea.vmem [#allocation5], %s432_s4 }
  0x26   : > { %641 = dma.done.wait (%p736_p8), %s211_s25, 256  }
  0x27   : > { %643 = vsyncadd (%p736_p8), %s211_s25, 4294967040  ;;  %v243_v0 = vld [vmem:[%s783_s7] sm:$0x3]  ;;  %v435_v2 = vld [vmem:[%s783_s7 + $0x2] sm:$0x3]  ;;  %s434_s21 = sshll.u32 %s779_s3, 1 }
  0x28   : > { %v244_v1 = vld [vmem:[%s790_s26] sm:$0x3]  ;;  %vm247_vm0 = vcmp.gt.f32.partialorder %v435_v2, %v243_v0  ;;  %v436_v3 = vld [vmem:[%s790_s26 + $0x2] sm:$0x3]  ;;  %v437_v4 = vld [vmem:[%s783_s7 + $0x4] sm:$0x3] }
  0x29   : > { %v438_v5 = vld [vmem:[%s790_s26 + $0x4] sm:$0x3]  ;;  %v248_v6 = vsel %vm247_vm0, %v435_v2, %v243_v0  ;;  %v251_v7 = vsel %vm247_vm0, %v436_v3, %v244_v1  ;;  %v439_v8 = vld [vmem:[%s783_s7 + $0x6] sm:$0x3]  ;;  %v441_v12 = vld [vmem:[%s783_s7 + $0x8] sm:$0x3] }
  0x2a   : > { %vm254_vm1 = vcmp.gt.f32.partialorder %v437_v4, %v248_v6  ;;  %v440_v9 = vld [vmem:[%s790_s26 + $0x6] sm:$0x3]  ;;  %s450_s27 = sshll.u32 %s662_s12, 1  ;;  %v442_v13 = vld [vmem:[%s790_s26 + $0x8] sm:$0x3]  ;;  %s240_s12 = scalar_lea.vmem [#allocation7], %s434_s21 }
  0x2b   : > { %v255_v10 = vsel %vm254_vm1, %v437_v4, %v248_v6  ;;  %v258_v11 = vsel %vm254_vm1, %v438_v5, %v251_v7  ;;  %v443_v16 = vld [vmem:[%s783_s7 + $0xa] sm:$0x3]  ;;  %s306_s15 = scalar_lea.hbm %s853_s2, %s450_s27  ;;  %v445_v20 = vld [vmem:[%s783_s7 + $0xc] sm:$0x3]  ;;  %v447_v24 = vld [vmem:[%s783_s7 + $0xe] sm:$0x3] }
  0x2c   : > { %vm261_vm2 = vcmp.gt.f32.partialorder %v439_v8, %v255_v10  ;;  %v444_v17 = vld [vmem:[%s790_s26 + $0xa] sm:$0x3]  ;;  %v446_v21 = vld [vmem:[%s790_s26 + $0xc] sm:$0x3]  ;;  %s308_s16 = sshll.u32 %s240_s12, 4  ;;  %s310_s18 = sshll.u32 %s306_s15, 4  ;;  %s309_s16 = int_to_ptr.vmem [resolvable:$true] %s308_s16  ;;  %s311_s18 = int_to_ptr.hbm [resolvable:$true] %s310_s18 }
  0x2d   : > { %v262_v14 = vsel %vm261_vm2, %v439_v8, %v255_v10  ;;  %v265_v15 = vsel %vm261_vm2, %v440_v9, %v258_v11  ;;  %v448_v25 = vld [vmem:[%s790_s26 + $0xe] sm:$0x3]  ;;  %s295_s20 = scalar_lea.sflag [#allocation4], %s779_s3  ;;  %s598_s28 = sshra.s32 %s311_s18, 4  ;;  %s599_s28 = int_to_ptr.hbm [resolvable:$true] %s598_s28 }
  0x2e   : > { %vm268_vm3 = vcmp.gt.f32.partialorder %v441_v12, %v262_v14  ;;  %s600_s19 = scalar_lea.hbm %s599_s28, 2  ;;  %s604_s4 = scalar_lea.hbm %s853_s2, 4 }
  0x2f   : > { %v269_v18 = vsel %vm268_vm3, %v441_v12, %v262_v14  ;;  %v272_v19 = vsel %vm268_vm3, %v442_v13, %v265_v15  ;;  %p601_p4 = scmp.ne.s32.totalorder %s599_s28, %s600_s19  ;;  %p605_p7 = scmp.lt.s32.totalorder %s599_s28, %s853_s2 }
  0x30   : > { %vm275_vm4 = vcmp.gt.f32.partialorder %v443_v16, %v269_v18  ;;  %p606_p8 = scmp.lt.s32.totalorder %s604_s4, %s600_s19 }
  0x31   : > { %v276_v22 = vsel %vm275_vm4, %v443_v16, %v269_v18  ;;  %v279_v23 = vsel %vm275_vm4, %v444_v17, %v272_v19  ;;  %p602_p5 = pnand %p601_p4, %p740_p9 }
  0x32   : > { %vm282_vm5 = vcmp.gt.f32.partialorder %v445_v20, %v276_v22  ;;  %p607_p10 = por %p606_p8, %p605_p7 }
  0x33   : > { %v283_v26 = vsel %vm282_vm5, %v445_v20, %v276_v22  ;;  %v286_v27 = vsel %vm282_vm5, %v446_v21, %v279_v23  ;;  %p603_p6 = pneg %p602_p5 }
  0x34   : > { %vm289_vm6 = vcmp.gt.f32.partialorder %v447_v24, %v283_v26 }
  0x35   : > { %v292_v28 = vsel %vm289_vm6, %v448_v25, %v286_v27  ;;  %p608_p13 = pnand %p607_p10, %p603_p6 }
  0x36   : > { %293 = vst [vmem:[%s240_s12] sm:$0x3] %v292_v28 }
  0x37   : > { %611 = shalt.err (!%p608_p13)
}
  0x38   : > { %459 = dma.vmem_to_hbm [thread:$0]  (%p740_p9), %s309_s16, 32, %s311_s18, %s295_s20  }
  0x39 PF: > { %s322_s3 = sand.u32 1, %s650_s9   ;;  %p469_p0 = pnand %p424_p12, %p747_p11 }
  0x3a   : > { %s323_s25 = scalar_lea.sflag [#allocation4], %s322_s3 }
  0x3b   : > { %p470_p1 = pneg %p469_p0 }
  0x3d   : > { %645 = dma.done.wait (%p470_p1), %s323_s25, 32  }
  0x3e   : > { %647 = vsyncadd (%p470_p1), %s323_s25, 4294967264  ;;  %s21_s14 = sadd.s32 1, %s670_s14   ;;  %s859_s9 = smov %s654_s10 }
  0x3f   : > { %p18_p2 = scmp.ge.s32.totalorder %s21_s14, 4   ;;  %s860_s10 = smov %s658_s11 }
  0x40   : > { %s861_s11 = smov %s745_s23  ;;  %s862_s12 = smov %s666_s13 }
  0x41   : > { %s863_s13 = smov %s865_s17  ;;  %20 = sbr.rel (!%p18_p2) target bundleno = 8 (0x8), region = 100 }
  0x46   :  { %329 = vsyncpa [#allocation3], 1 }
  0x47   :  { %331 = vsyncpa [#allocation3 + $0x1], 1 }
  0x48   :  { %332 = vsyncpa [#allocation6], 1 }
  0x49   :  { %334 = vsyncpa [#allocation6 + $0x1], 1 }
  0x4a   :  { %335 = vsyncpa [#allocation4], 1 }
  0x4b   :  { %337 = vsyncpa [#allocation4 + $0x1], 1 }

</bundles_post_ra>
